<compile_context>
chip_gen: v6e
topology: v6e:2x2x1
jax: 0.10.0
libtpu: 0.0.40
codegen_flags: <defaults>
</compile_context>

<pallas_src>
import functools

import jax
import jax.numpy as jnp
from jax.experimental import pallas as pl
from jax.experimental.pallas import tpu as pltpu


def _textcnn_kernel(kernel_list, B, L, C,
                    keys_ref, tab_ref, wconv_ref, fcw_ref, fcb_ref, out_ref):
    w_max = max(kernel_list)
    BL = B * L
    K1 = tab_ref.shape[0]        # w_max * Vp (one-hot width)
    NC = wconv_ref.shape[1]      # 128 (conv channels padded to full lanes)

    # ---- shifted one-hot: 4 ones per row, one in each Vp block (tap i picks
    #      token t+i); keys are precomputed host-side so no in-kernel shuffles.
    k_iota = jax.lax.broadcasted_iota(jnp.int32, (BL, K1), 1)
    onehot = jnp.zeros((BL, K1), jnp.float32)
    for i in range(w_max):
        onehot = onehot + jnp.where(k_iota == keys_ref[i], 1.0, 0.0)
    onehot = onehot.astype(tab_ref.dtype)                       # exact 0/1 in bf16

    # ---- fused gather + im2col: one MXU pass against the block-diagonal
    #      bf16 table yields the whole (BL, w_max*E) slab, already bf16-exact.
    slab = jnp.dot(onehot, tab_ref[...],
                   preferred_element_type=jnp.float32)          # (BL, w_max*E) f32
    slab = slab.astype(wconv_ref.dtype)                         # exact table rows

    # ---- all conv widths in a single lane-dense matmul (K=128, N=128) ----
    conv = jnp.dot(slab, wconv_ref[...],
                   preferred_element_type=jnp.float32)          # (BL, 128) f32
    conv = conv.reshape(B, L, NC)

    # ---- mask time positions invalid for each width (limits baked at trace
    #      time from a single lane iota), then max-pool over time ----
    lane = jax.lax.broadcasted_iota(jnp.int32, (1, 1, NC), 2)
    limit = jnp.full((1, 1, NC), L - 1, jnp.int32)   # padded lanes: conv==0, any limit ok
    for j, w in enumerate(kernel_list):
        limit = jnp.where((lane >= j * C) & (lane < (j + 1) * C), L - w, limit)
    t_pos = jax.lax.broadcasted_iota(jnp.int32, (1, L, 1), 1)
    conv = jnp.where(t_pos <= limit, conv, jnp.float32(-1e30))
    pooled = jnp.max(conv, axis=1)                              # (B, 128) f32
    # TODO(synk): nn.Dropout runs in eval/inference mode -> identity (no RNG mask).

    # ---- classifier; conv bias pre-folded into fcb; 128-lane output slab ----
    logits = jnp.dot(pooled.astype(fcw_ref.dtype), fcw_ref[...],
                     preferred_element_type=jnp.float32) + fcb_ref[...]
    out_ref[...] = logits.astype(out_ref.dtype)


def pack_textcnn_params(embed_table, conv_params, fc_w, fc_b, kernel_list,
                        lanes=128):
    """One-time host-side packing: 3 bf16 matmul operands + 1 f32 bias row,
    all padded to 128 lanes, conv bias folded into the FC bias."""
    V, E = embed_table.shape
    C = conv_params[0][0].shape[-1]
    w_max = max(kernel_list)
    nC = len(kernel_list) * C
    ncls = fc_w.shape[-1]
    Vp = ((V + lanes - 1) // lanes) * lanes         # vocab padded to a lane multiple

    # Block-diagonal vocab-padded table: one MXU pass turns the shifted one-hot
    # (BL, w_max*Vp) into the full bf16 im2col slab (BL, w_max*E).
    tab_pad = jnp.zeros((Vp, E), jnp.float32).at[:V, :].set(embed_table)
    tab_blk = jnp.zeros((w_max * Vp, w_max * E), jnp.float32)
    for i in range(w_max):
        tab_blk = tab_blk.at[i * Vp:(i + 1) * Vp, i * E:(i + 1) * E].set(tab_pad)

    # Conv kernels zero-padded to w_max taps, stacked tap-major; channel dim
    # padded nC -> 128 so the conv matmul N (and the FC K) is lane-dense.
    cols = []
    for (w_arr, _), w in zip(conv_params, kernel_list):
        padded = jnp.concatenate(
            [w_arr, jnp.zeros((w_max - w, E, C), w_arr.dtype)], axis=0)  # (w_max,E,C)
        cols.append(padded.reshape(w_max * E, C))
    w_stack = jnp.concatenate(cols, axis=-1)                             # (w_max*E, nC)
    w_stack = jnp.zeros((w_max * E, lanes), jnp.float32).at[:, :nC].set(w_stack)

    # FC padded to (128, 128); conv bias folded into the FC bias row
    # (exact at inference: dropout is identity and max(conv+b) == max(conv)+b).
    conv_bias = jnp.concatenate([b for (_, b) in conv_params], axis=-1)  # (1, nC)
    conv_bias = jnp.zeros((1, lanes), jnp.float32).at[:, :nC].set(conv_bias)
    fc_w_pad = jnp.zeros((lanes, lanes), jnp.float32).at[:nC, :ncls].set(fc_w)
    fc_b_pad = jnp.zeros((1, lanes), jnp.float32).at[:, :ncls].set(fc_b)
    fc_b_pad = fc_b_pad + conv_bias @ fc_w_pad

    return dict(
        tab_blk=tab_blk.astype(jnp.bfloat16),
        w_stack=w_stack.astype(jnp.bfloat16),
        fc_w=fc_w_pad.astype(jnp.bfloat16),
        fc_b=fc_b_pad.astype(jnp.float32),
        kernel_list=tuple(kernel_list),
        num_classes=ncls, vocab_size=V, vocab_pad=Vp,
        embed_dim=E, channel_dim=C,
    )


def textcnn_forward(x, packed):
    """x: (B, L) int token ids.  Returns (B, num_classes) f32 logits."""
    B, L = x.shape
    kernel_list = packed["kernel_list"]
    w_max = max(kernel_list)
    assert L >= w_max, "sequence length must cover the widest conv kernel"
    V, Vp = packed["vocab_size"], packed["vocab_pad"]
    C = packed["channel_dim"]
    lanes = packed["fc_w"].shape[-1]
    ncls = packed["num_classes"]
    BL = B * L

    # nn.Embedding would raise on out-of-range ids; clamp defensively here.
    ids = jnp.clip(x.astype(jnp.int32), 0, V - 1)
    # Shifted one-hot keys: key[i, b*L + t] = i*Vp + id[b, min(t+i, L-1)].
    # The clamped tail positions only feed time steps that are masked out
    # before the max-pool, so the clamp never changes the result.
    keys = jnp.stack(
        [i * Vp + ids[:, jnp.minimum(jnp.arange(L) + i, L - 1)].reshape(BL, 1)
         for i in range(w_max)], axis=0)                      # (w_max, BL, 1) int32

    kern = functools.partial(_textcnn_kernel, kernel_list, B, L, C)
    arrays = [keys, packed["tab_blk"], packed["w_stack"],
              packed["fc_w"], packed["fc_b"]]

    out = pl.pallas_call(
        kern,
        out_shape=jax.ShapeDtypeStruct((B, lanes), jnp.float32),
        # No grid: single invocation, whole arrays resident in VMEM (no 1-step
        # pipeline overhead, no double-buffering of the weight slabs).
        in_specs=[pl.BlockSpec(memory_space=pltpu.MemorySpace.VMEM)
                  for _ in arrays],
        out_specs=pl.BlockSpec(memory_space=pltpu.MemorySpace.VMEM),
    )(*arrays)
    return out[:, :ncls]   # lane-dense (B, 128) slab in-kernel; slice outside


if __name__ == "__main__":
    # Module hyper-parameters (small, consistent with TextCNN.__init__).
    vocab_size, embedding_dim, channel_dim = 50, 32, 8
    kernel_list = [2, 3, 4]
    num_classes = 2
    B, L = 2, 16  # batch, sequence length

    key = jax.random.PRNGKey(0)
    rng = jax.random.split(key, 3 + 2 * len(kernel_list))

    embed_table = 0.1 * jax.random.normal(rng[0], (vocab_size, embedding_dim), jnp.float32)
    conv_params = []
    for i, w in enumerate(kernel_list):
        wk = 0.1 * jax.random.normal(rng[1 + 2 * i], (w, embedding_dim, channel_dim), jnp.float32)
        bk = 0.1 * jax.random.normal(rng[2 + 2 * i], (1, channel_dim), jnp.float32)
        conv_params.append((wk, bk))
    fc_w = 0.1 * jax.random.normal(rng[-2], (len(kernel_list) * channel_dim, num_classes), jnp.float32)
    fc_b = 0.1 * jax.random.normal(rng[-1], (1, num_classes), jnp.float32)

    x = jax.random.randint(jax.random.PRNGKey(1), (B, L), 0, vocab_size)

    packed = pack_textcnn_params(embed_table, conv_params, fc_w, fc_b, kernel_list)
    logits = textcnn_forward(x, packed)
    jax.block_until_ready(logits)

    # Pure-JAX f32 reference of the PyTorch forward pass (conv + bias ->
    # max-pool over time -> concat -> linear; no ReLU, dropout = identity).
    # bf16 packed weights give ~1e-3-level deviation; tolerance covers it.
    emb = embed_table[x]
    pooled = []
    for (wk, bk), w in zip(conv_params, kernel_list):
        Lp = L - w + 1
        acc = jnp.zeros((B, Lp, channel_dim), jnp.float32)
        for i in range(w):
            acc = acc + jnp.einsum("ble,ec->blc", emb[:, i:i + Lp, :], wk[i])
        pooled.append(jnp.max(acc + bk[None], axis=1))
    ref = jnp.concatenate(pooled, axis=-1) @ fc_w + fc_b

    assert logits.shape == (B, num_classes) and logits.dtype == jnp.float32
    assert jnp.allclose(logits, ref, atol=2e-2, rtol=2e-2), (logits, ref)
    print("KERNEL_OK")
</pallas_src>

<mosaic_0001>
module attributes {stable_mosaic.version = 11 : i64} {
  func.func @_textcnn_kernel(%arg0: memref<4x32x1xi32, #tpu.memory_space<vmem>>, %arg1: memref<512x128xbf16, #tpu.memory_space<vmem>>, %arg2: memref<128x128xbf16, #tpu.memory_space<vmem>>, %arg3: memref<128x128xbf16, #tpu.memory_space<vmem>>, %arg4: memref<1x128xf32, #tpu.memory_space<vmem>>, %arg5: memref<2x128xf32, #tpu.memory_space<vmem>>) attributes {dimension_semantics = [], scalar_prefetch = 0 : i64, scratch_operands = 0 : i64, tpu.core_type = #tpu.core_type<tc>} {
    %0 = tpu.iota {dimensions = array<i32: 1>} : vector<32x512xi32>
    %cst = arith.constant 0.000000e+00 : f32
    %1 = vector.broadcast %cst : f32 to vector<32x512xf32>
    %c0 = arith.constant 0 : index
    %c0_0 = arith.constant 0 : index
    %c0_1 = arith.constant 0 : index
    %2 = vector.load %arg0[%c0, %c0_0, %c0_1] : memref<4x32x1xi32, #tpu.memory_space<vmem>>, vector<1x32x1xi32>
    %3 = vector.shape_cast %2 : vector<1x32x1xi32> to vector<32x1xi32>
    %4 = vector.broadcast %3 : vector<32x1xi32> to vector<32x512xi32>
    %5 = arith.cmpi eq, %0, %4 : vector<32x512xi32>
    %cst_2 = arith.constant 1.000000e+00 : f32
    %cst_3 = arith.constant 0.000000e+00 : f32
    %6 = vector.broadcast %cst_2 : f32 to vector<32x512xf32>
    %7 = vector.broadcast %cst_3 : f32 to vector<32x512xf32>
    %8 = arith.select %5, %6, %7 : vector<32x512xi1>, vector<32x512xf32>
    %9 = arith.addf %1, %8 : vector<32x512xf32>
    %c1 = arith.constant 1 : index
    %c0_4 = arith.constant 0 : index
    %c0_5 = arith.constant 0 : index
    %10 = vector.load %arg0[%c1, %c0_4, %c0_5] : memref<4x32x1xi32, #tpu.memory_space<vmem>>, vector<1x32x1xi32>
    %11 = vector.shape_cast %10 : vector<1x32x1xi32> to vector<32x1xi32>
    %12 = vector.broadcast %11 : vector<32x1xi32> to vector<32x512xi32>
    %13 = arith.cmpi eq, %0, %12 : vector<32x512xi32>
    %cst_6 = arith.constant 1.000000e+00 : f32
    %cst_7 = arith.constant 0.000000e+00 : f32
    %14 = vector.broadcast %cst_6 : f32 to vector<32x512xf32>
    %15 = vector.broadcast %cst_7 : f32 to vector<32x512xf32>
    %16 = arith.select %13, %14, %15 : vector<32x512xi1>, vector<32x512xf32>
    %17 = arith.addf %9, %16 : vector<32x512xf32>
    %c2 = arith.constant 2 : index
    %c0_8 = arith.constant 0 : index
    %c0_9 = arith.constant 0 : index
    %18 = vector.load %arg0[%c2, %c0_8, %c0_9] : memref<4x32x1xi32, #tpu.memory_space<vmem>>, vector<1x32x1xi32>
    %19 = vector.shape_cast %18 : vector<1x32x1xi32> to vector<32x1xi32>
    %20 = vector.broadcast %19 : vector<32x1xi32> to vector<32x512xi32>
    %21 = arith.cmpi eq, %0, %20 : vector<32x512xi32>
    %cst_10 = arith.constant 1.000000e+00 : f32
    %cst_11 = arith.constant 0.000000e+00 : f32
    %22 = vector.broadcast %cst_10 : f32 to vector<32x512xf32>
    %23 = vector.broadcast %cst_11 : f32 to vector<32x512xf32>
    %24 = arith.select %21, %22, %23 : vector<32x512xi1>, vector<32x512xf32>
    %25 = arith.addf %17, %24 : vector<32x512xf32>
    %c3 = arith.constant 3 : index
    %c0_12 = arith.constant 0 : index
    %c0_13 = arith.constant 0 : index
    %26 = vector.load %arg0[%c3, %c0_12, %c0_13] : memref<4x32x1xi32, #tpu.memory_space<vmem>>, vector<1x32x1xi32>
    %27 = vector.shape_cast %26 : vector<1x32x1xi32> to vector<32x1xi32>
    %28 = vector.broadcast %27 : vector<32x1xi32> to vector<32x512xi32>
    %29 = arith.cmpi eq, %0, %28 : vector<32x512xi32>
    %cst_14 = arith.constant 1.000000e+00 : f32
    %cst_15 = arith.constant 0.000000e+00 : f32
    %30 = vector.broadcast %cst_14 : f32 to vector<32x512xf32>
    %31 = vector.broadcast %cst_15 : f32 to vector<32x512xf32>
    %32 = arith.select %29, %30, %31 : vector<32x512xi1>, vector<32x512xf32>
    %33 = arith.addf %25, %32 : vector<32x512xf32>
    %34 = arith.truncf %33 : vector<32x512xf32> to vector<32x512xbf16>
    %c0_16 = arith.constant 0 : index
    %c0_17 = arith.constant 0 : index
    %35 = vector.load %arg1[%c0_16, %c0_17] : memref<512x128xbf16, #tpu.memory_space<vmem>>, vector<512x128xbf16>
    %cst_18 = arith.constant dense<0.000000e+00> : vector<32x128xf32>
    %36 = tpu.matmul %34, %35, %cst_18 {dimension_numbers = #tpu.dot_dimension_numbers<[1], [0], [0], [1], [0, 0, 1, 1], [], []>} : vector<32x512xbf16>, vector<512x128xbf16>, vector<32x128xf32> -> vector<32x128xf32>
    %37 = arith.truncf %36 : vector<32x128xf32> to vector<32x128xbf16>
    %c0_19 = arith.constant 0 : index
    %c0_20 = arith.constant 0 : index
    %38 = vector.load %arg2[%c0_19, %c0_20] : memref<128x128xbf16, #tpu.memory_space<vmem>>, vector<128x128xbf16>
    %cst_21 = arith.constant dense<0.000000e+00> : vector<32x128xf32>
    %39 = tpu.matmul %37, %38, %cst_21 {dimension_numbers = #tpu.dot_dimension_numbers<[1], [0], [0], [1], [0, 0, 1, 1], [], []>} : vector<32x128xbf16>, vector<128x128xbf16>, vector<32x128xf32> -> vector<32x128xf32>
    %40 = vector.shape_cast %39 : vector<32x128xf32> to vector<2x16x128xf32>
    %41 = tpu.iota {dimensions = array<i32: 2>} : vector<1x1x128xi32>
    %c15_i32 = arith.constant 15 : i32
    %42 = vector.broadcast %c15_i32 : i32 to vector<1x1x128xi32>
    %c0_i32 = arith.constant 0 : i32
    %43 = vector.broadcast %c0_i32 : i32 to vector<1x1x128xi32>
    %44 = arith.cmpi sge, %41, %43 : vector<1x1x128xi32>
    %c8_i32 = arith.constant 8 : i32
    %45 = vector.broadcast %c8_i32 : i32 to vector<1x1x128xi32>
    %46 = arith.cmpi slt, %41, %45 : vector<1x1x128xi32>
    %47 = arith.andi %44, %46 : vector<1x1x128xi1>
    %c14_i32 = arith.constant 14 : i32
    %48 = vector.broadcast %c14_i32 : i32 to vector<1x1x128xi32>
    %49 = arith.select %47, %48, %42 : vector<1x1x128xi1>, vector<1x1x128xi32>
    %c8_i32_22 = arith.constant 8 : i32
    %50 = vector.broadcast %c8_i32_22 : i32 to vector<1x1x128xi32>
    %51 = arith.cmpi sge, %41, %50 : vector<1x1x128xi32>
    %c16_i32 = arith.constant 16 : i32
    %52 = vector.broadcast %c16_i32 : i32 to vector<1x1x128xi32>
    %53 = arith.cmpi slt, %41, %52 : vector<1x1x128xi32>
    %54 = arith.andi %51, %53 : vector<1x1x128xi1>
    %c13_i32 = arith.constant 13 : i32
    %55 = vector.broadcast %c13_i32 : i32 to vector<1x1x128xi32>
    %56 = arith.select %54, %55, %49 : vector<1x1x128xi1>, vector<1x1x128xi32>
    %c16_i32_23 = arith.constant 16 : i32
    %57 = vector.broadcast %c16_i32_23 : i32 to vector<1x1x128xi32>
    %58 = arith.cmpi sge, %41, %57 : vector<1x1x128xi32>
    %c24_i32 = arith.constant 24 : i32
    %59 = vector.broadcast %c24_i32 : i32 to vector<1x1x128xi32>
    %60 = arith.cmpi slt, %41, %59 : vector<1x1x128xi32>
    %61 = arith.andi %58, %60 : vector<1x1x128xi1>
    %c12_i32 = arith.constant 12 : i32
    %62 = vector.broadcast %c12_i32 : i32 to vector<1x1x128xi32>
    %63 = arith.select %61, %62, %56 : vector<1x1x128xi1>, vector<1x1x128xi32>
    %64 = tpu.iota {dimensions = array<i32: 1>} : vector<1x16x1xi32>
    %65 = vector.broadcast %64 : vector<1x16x1xi32> to vector<1x16x128xi32>
    %66 = vector.broadcast %63 : vector<1x1x128xi32> to vector<1x16x128xi32>
    %67 = arith.cmpi sle, %65, %66 : vector<1x16x128xi32>
    %cst_24 = arith.constant -1.000000e+30 : f32
    %68 = vector.shape_cast %67 : vector<1x16x128xi1> to vector<1x16x128xi1>
    %69 = vector.broadcast %68 : vector<1x16x128xi1> to vector<2x16x128xi1>
    %70 = vector.broadcast %cst_24 : f32 to vector<2x16x128xf32>
    %71 = arith.select %69, %40, %70 : vector<2x16x128xi1>, vector<2x16x128xf32>
    %cst_25 = arith.constant dense<0xFF800000> : vector<2x128xf32>
    %72 = vector.multi_reduction <maximumf>, %71, %cst_25 [1] : vector<2x16x128xf32> to vector<2x128xf32>
    %73 = arith.truncf %72 : vector<2x128xf32> to vector<2x128xbf16>
    %c0_26 = arith.constant 0 : index
    %c0_27 = arith.constant 0 : index
    %74 = vector.load %arg3[%c0_26, %c0_27] : memref<128x128xbf16, #tpu.memory_space<vmem>>, vector<128x128xbf16>
    %cst_28 = arith.constant dense<0.000000e+00> : vector<2x128xf32>
    %75 = tpu.matmul %73, %74, %cst_28 {dimension_numbers = #tpu.dot_dimension_numbers<[1], [0], [0], [1], [0, 0, 1, 1], [], []>} : vector<2x128xbf16>, vector<128x128xbf16>, vector<2x128xf32> -> vector<2x128xf32>
    %c0_29 = arith.constant 0 : index
    %c0_30 = arith.constant 0 : index
    %76 = vector.load %arg4[%c0_29, %c0_30] : memref<1x128xf32, #tpu.memory_space<vmem>>, vector<1x128xf32>
    %77 = vector.broadcast %76 : vector<1x128xf32> to vector<2x128xf32>
    %78 = arith.addf %75, %77 : vector<2x128xf32>
    %c0_31 = arith.constant 0 : index
    %c0_32 = arith.constant 0 : index
    %79 = vector.load %arg5[%c0_31, %c0_32] : memref<2x128xf32, #tpu.memory_space<vmem>>, vector<2x128xf32>
    tpu.vector_store %arg5[%c0_31, %c0_32], %78 {strides = array<i32>} : memref<2x128xf32, #tpu.memory_space<vmem>>, vector<2x128xf32>,
    return
  }
}

</mosaic_0001>

<bundles_post_ra>
// kernel: tpu_custom_call.1
= control target key start
LH: loop header
LB: loop body
LE: loop exit
PB: predicated region body
PF: predicated region fallthrough
CT: control target
= control target key end

     0   :  { %10 = vsyncpa [#allocation3], 0  ;;  %s1584_s0 = inlined_call_operand.vmem [shape: s32[4,32,1], index: 0, kind: input, shape index: {}]   ;;  %s1585_s1 = inlined_call_operand.hbm [shape: bf16[512,128], index: 1, kind: input, shape index: {}]   ;;  %s1586_s2 = inlined_call_operand.vmem [shape: bf16[128,128], index: 2, kind: input, shape index: {}]   ;;  %s1587_s3 = inlined_call_operand.vmem [shape: bf16[128,128], index: 3, kind: input, shape index: {}]   ;;  %s1588_s4 = inlined_call_operand.vmem [shape: f32[1,128], index: 4, kind: input, shape index: {}]   ;;  %s1589_s5 = inlined_call_operand.hbm [shape: f32[2,128], index: 5, kind: output, shape index: {}]  }
   0x1   :  { %11 = vsyncpa [#allocation4], 0  ;;  %s1231_s18 = smov [#allocation2]  }
   0x2   :  { %s19_s19 = sshll.u32 %s1231_s18, 4  ;;  %s20_s19 = int_to_ptr.vmem [resolvable:$true] %s19_s19 }
   0x3   :  { %s1195_s20 = scalar_lea.vmem %s20_s19, 4096  ;;  %p1200_p1 = scmp.lt.s32.totalorder %s20_s19, %s20_s19 }
   0x4   :  { %p1196_p0 = scmp.ne.s32.totalorder %s20_s19, %s1195_s20  ;;  %p1201_p2 = scmp.lt.s32.totalorder %s1195_s20, %s1195_s20 }
   0x6   :  { %p1202_p3 = por %p1201_p2, %p1200_p1 }
   0x8   :  { %p1203_p4 = pnand %p1202_p3, %p1196_p0 }
   0xa   :  { %1206 = shalt.err (!%p1203_p4)
}
   0xb   :  { %s1232_s21 = smov 64   ;;  %s1233_s22 = smov 4  }
   0xc   :  { %25 = dma.hbm_to_vmem [thread:$0]  %s1585_s1, 4096, %s20_s19, [#allocation3], %s1232_s21, %s1232_s21, %s1233_s22  }
   0xd   :  { %1227 = dma.done.wait [#allocation3], 4096  }
   0xe   :  { %1228 = vsyncadd [#allocation3], 4294963200  ;;  %v1234_v0 = vmov 0   ;;  %v953_v1 = vld [vmem:[%s1584_s0 + $0x20] sm:$0xff]  ;;  %v954_v3 = vld [vmem:[%s1584_s0 + $0x28] sm:$0xff]  ;;  %v1235_v49 = vmov 0.0   ;;  %v36_v51 = vlaneseq }
   0xf   :  { %1138 = vset.pattern.permute.xlu1 %v1234_v0  ;;  %1137 = vset.pattern.permute.xlu0 %v1234_v0  ;;  %v41_v2 = vld [vmem:[%s1584_s0] sm:$0xff]  ;;  %v42_v4 = vld [vmem:[%s1584_s0 + $0x8] sm:$0xff]  ;;  %v1139_v7 = vld [vmem:[#allocation2 + $0x78] sm:$0xff]   ;;  %s1238_s9 = smov [#allocation5]  }
  0x10   :  { %111 = vperm.xlu1 %1138, %v953_v1   ;;  %46 = vperm.xlu0 %1137, %v41_v2   ;;  %v958_v5 = vld [vmem:[%s1584_s0 + $0x48] sm:$0xff]  ;;  %v957_v6 = vld [vmem:[%s1584_s0 + $0x40] sm:$0xff]  ;;  %v1140_v8 = vld [vmem:[#allocation2 + $0xf8] sm:$0xff]   ;;  %v1328_v52 = vand.u32 127, %v36_v51  ;;  %s944_s10 = sshll.u32 %s1238_s9, 4  ;;  %s945_s10 = int_to_ptr.vmem [resolvable:$true] %s944_s10 }
  0x11   :  { %v962_v9 = vld [vmem:[%s1584_s0 + $0x68] sm:$0xff]  ;;  %v961_v10 = vld [vmem:[%s1584_s0 + $0x60] sm:$0xff]  ;;  %1014 = vmatprep.subr.bf16.mxu0 %v1139_v7  ;;  %v1141_v11 = vld [vmem:[#allocation2 + $0x38] sm:$0xff]   ;;  %1042 = vmatprep.subr.bf16.mxu1 %v1140_v8  ;;  %s1207_s11 = scalar_lea.vmem %s945_s10, 32  ;;  %p1212_p6 = scmp.lt.s32.totalorder %s945_s10, %s945_s10 }
  0x12   :  { %v1142_v12 = vld [vmem:[#allocation2 + $0xb8] sm:$0xff]   ;;  %1015 = vmatpush3.bf16.msra.mxu0 %v1141_v11  ;;  %v1143_v13 = vld [vmem:[#allocation2 + $0x70] sm:$0xff]   ;;  %v1147_v19 = vld [vmem:[#allocation2 + $0x68] sm:$0xff]   ;;  %v1331_v53 = vadd.s32 128, %v1328_v52  ;;  %v1334_v54 = vadd.s32 256, %v1328_v52  ;;  %v1337_v55 = vadd.s32 384, %v1328_v52  ;;  %p1208_p5 = scmp.ne.s32.totalorder %s945_s10, %s1207_s11  ;;  %p1213_p7 = scmp.lt.s32.totalorder %s1207_s11, %s1207_s11 }
  0x13   :  { %1043 = vmatpush3.bf16.msra.mxu1 %v1142_v12  ;;  %v1144_v14 = vld [vmem:[#allocation2 + $0xf0] sm:$0xff]   ;;  %v44_v15 = vld [vmem:[%s1584_s0 + $0x18] sm:$0xff]  ;;  %1016 = vmatprep.subr.bf16.mxu0 %v1143_v13  ;;  %v1148_v20 = vld [vmem:[#allocation2 + $0xe8] sm:$0xff]  }
  0x14   :  { %114 = vperm.xlu1 %1138, %v954_v3   ;;  %49 = vperm.xlu0 %1137, %v42_v4   ;;  %v43_v16 = vld [vmem:[%s1584_s0 + $0x10] sm:$0xff]  ;;  %v956_v21 = vld [vmem:[%s1584_s0 + $0x38] sm:$0xff]  ;;  %v1149_v23 = vld [vmem:[#allocation2 + $0x28] sm:$0xff]   ;;  %p1214_p8 = por %p1213_p7, %p1212_p6 }
  0x15   :  { %v1145_v17 = vld [vmem:[#allocation2 + $0x30] sm:$0xff]   ;;  %1044 = vmatprep.subr.bf16.mxu1 %v1144_v14  ;;  %v1150_v24 = vld [vmem:[#allocation2 + $0xa8] sm:$0xff]   ;;  %v1151_v25 = vld [vmem:[#allocation2 + $0x60] sm:$0xff]  }
  0x16   :  { %v1146_v18 = vld [vmem:[#allocation2 + $0xb0] sm:$0xff]   ;;  %1017 = vmatpush3.bf16.msra.mxu0 %v1145_v17  ;;  %v1152_v26 = vld [vmem:[#allocation2 + $0xe0] sm:$0xff]   ;;  %v960_v27 = vld [vmem:[%s1584_s0 + $0x58] sm:$0xff]  ;;  %p1215_p9 = pnand %p1214_p8, %p1208_p5 }
  0x17   :  { %1045 = vmatpush3.bf16.msra.mxu1 %v1146_v18  ;;  %v955_v22 = vld [vmem:[%s1584_s0 + $0x30] sm:$0xff]  ;;  %1018 = vmatprep.subr.bf16.mxu0 %v1147_v19  ;;  %v1153_v29 = vld [vmem:[#allocation2 + $0x20] sm:$0xff]   ;;  %v1155_v31 = vld [vmem:[#allocation2 + $0x58] sm:$0xff]  }
  0x18   :  { %179 = vperm.xlu1 %1138, %v958_v5   ;;  %176 = vperm.xlu0 %1137, %v957_v6   ;;  %v959_v28 = vld [vmem:[%s1584_s0 + $0x50] sm:$0xff]  ;;  %v1154_v30 = vld [vmem:[#allocation2 + $0xa0] sm:$0xff]   ;;  %v1156_v32 = vld [vmem:[#allocation2 + $0xd8] sm:$0xff]  }
  0x19   :  { %1046 = vmatprep.subr.bf16.mxu1 %v1148_v20  ;;  %v964_v33 = vld [vmem:[%s1584_s0 + $0x78] sm:$0xff]  ;;  %v963_v34 = vld [vmem:[%s1584_s0 + $0x70] sm:$0xff]  ;;  %v1163_v41 = vld [vmem:[#allocation2 + $0x48] sm:$0xff]  }
  0x1a   :  { %1019 = vmatpush3.bf16.msra.mxu0 %v1149_v23  ;;  %v1157_v35 = vld [vmem:[#allocation2 + $0x18] sm:$0xff]   ;;  %v1159_v37 = vld [vmem:[#allocation2 + $0x50] sm:$0xff]   ;;  %v1164_v42 = vld [vmem:[#allocation2 + $0xc8] sm:$0xff]  }
  0x1b   :  { %1047 = vmatpush3.bf16.msra.mxu1 %v1150_v24  ;;  %1020 = vmatprep.subr.bf16.mxu0 %v1151_v25  ;;  %v1158_v36 = vld [vmem:[#allocation2 + $0x98] sm:$0xff]   ;;  %v1160_v38 = vld [vmem:[#allocation2 + $0xd0] sm:$0xff]   ;;  %v1165_v43 = vld [vmem:[#allocation2 + $0x8] sm:$0xff]  }
  0x1c   :  { %244 = vperm.xlu1 %1138, %v962_v9   ;;  %241 = vperm.xlu0 %1137, %v961_v10   ;;  %v1161_v39 = vld [vmem:[#allocation2 + $0x10] sm:$0xff]   ;;  %v1166_v44 = vld [vmem:[#allocation2 + $0x88] sm:$0xff]   ;;  %v1167_v45 = vld [vmem:[#allocation2 + $0x40] sm:$0xff]  }
  0x1d   :  { %1048 = vmatprep.subr.bf16.mxu1 %v1152_v26  ;;  %v1162_v40 = vld [vmem:[#allocation2 + $0x90] sm:$0xff]   ;;  %v1168_v46 = vld [vmem:[#allocation2 + $0xc0] sm:$0xff]   ;;  %v1324_v50 = vld [vmem:[%s1586_s2 + $0x38] sm:$0xff]  }
  0x1e   :  { %1021 = vmatpush3.bf16.msra.mxu0 %v1153_v29  ;;  %v1169_v47 = vld [vmem:[#allocation2] sm:$0xff]  }
  0x1f   :  { %1049 = vmatpush3.bf16.msra.mxu1 %v1154_v30  ;;  %1022 = vmatprep.subr.bf16.mxu0 %v1155_v31  ;;  %v1170_v48 = vld [vmem:[#allocation2 + $0x80] sm:$0xff]  }
  0x20   :  { %55 = vperm.xlu1 %1138, %v44_v15   ;;  %52 = vperm.xlu0 %1137, %v43_v16  }
  0x21   :  { %1050 = vmatprep.subr.bf16.mxu1 %v1156_v32 }
  0x22   :  { %1023 = vmatpush3.bf16.msra.mxu0 %v1157_v35 }
  0x23   :  { %1051 = vmatpush3.bf16.msra.mxu1 %v1158_v36  ;;  %1024 = vmatprep.subr.bf16.mxu0 %v1159_v37 }
  0x24   :  { %120 = vperm.xlu1 %1138, %v956_v21   ;;  %117 = vperm.xlu0 %1137, %v955_v22  }
  0x25   :  { %1052 = vmatprep.subr.bf16.mxu1 %v1160_v38 }
  0x26   :  { %1025 = vmatpush3.bf16.msra.mxu0 %v1161_v39 }
  0x27   :  { %1053 = vmatpush3.bf16.msra.mxu1 %v1162_v40  ;;  %1026 = vmatprep.subr.bf16.mxu0 %v1163_v41 }
  0x28   :  { %185 = vperm.xlu1 %1138, %v960_v27   ;;  %182 = vperm.xlu0 %1137, %v959_v28  }
  0x29   :  { %1054 = vmatprep.subr.bf16.mxu1 %v1164_v42 }
  0x2a   :  { %1027 = vmatpush3.bf16.msra.mxu0 %v1165_v43 }
  0x2b   :  { %1055 = vmatpush3.bf16.msra.mxu1 %v1166_v44  ;;  %1028 = vmatprep.subr.bf16.mxu0 %v1167_v45 }
  0x2c   :  { %250 = vperm.xlu1 %1138, %v964_v33   ;;  %247 = vperm.xlu0 %1137, %v963_v34  }
  0x2d   :  { %1056 = vmatprep.subr.bf16.mxu1 %v1168_v46 }
  0x2e   :  { %1029 = vmatpush3.bf16.msra.mxu0 %v1169_v47 }
  0x2f   :  { %1057 = vmatpush3.bf16.msra.mxu1 %v1170_v48  ;;  %1089 = vmatprep.subr.bf16.mxu0 %v1324_v50 }
  0x30   :  { %1109 = vmatprep.subr.bf16.mxu1 %v1235_v49 }
  0x8b   :  { %v112_v56 = vpop.permute.xlu1 %111  ;;  %v47_v57 = vpop.permute.xlu0 %46 }
  0x8c   :  { %vm122_vm0 = vcmp.eq.s32.totalorder %v1328_v52, %v112_v56  ;;  %vm123_vm1 = vcmp.eq.s32.totalorder %v1331_v53, %v112_v56  ;;  %vm124_vm2 = vcmp.eq.s32.totalorder %v1334_v54, %v112_v56  ;;  %vm125_vm3 = vcmp.eq.s32.totalorder %v1337_v55, %v112_v56 }
  0x8d   :  { %v138_v58 = vsel %vm122_vm0, 1.0, %v1235_v49  ;;  %v139_v59 = vsel %vm123_vm1, 1.0, %v1235_v49  ;;  %v140_v60 = vsel %vm124_vm2, 1.0, %v1235_v49  ;;  %vm57_vm4 = vcmp.eq.s32.totalorder %v1328_v52, %v47_v57 }
  0x8e   :  { %vm58_vm5 = vcmp.eq.s32.totalorder %v1331_v53, %v47_v57  ;;  %vm59_vm6 = vcmp.eq.s32.totalorder %v1334_v54, %v47_v57  ;;  %vm60_vm7 = vcmp.eq.s32.totalorder %v1337_v55, %v47_v57  ;;  %v1351_v61 = vsel %vm125_vm3, 1.0, %v1235_v49 }
  0x8f   :  { %v73_v62 = vsel %vm57_vm4, 1.0, %v1235_v49  ;;  %v74_v63 = vsel %vm58_vm5, 1.0, %v1235_v49  ;;  %v75_v0 = vsel %vm59_vm6, 1.0, %v1235_v49  ;;  %v115_v1 = vpop.permute.xlu1 %114  ;;  %v50_v2 = vpop.permute.xlu0 %49  ;;  %v1357_v3 = vsel %vm60_vm7, 1.0, %v1235_v49 }
  0x90   :  { %v154_v4 = vadd.f32 %v138_v58, %v73_v62  ;;  %vm126_vm8 = vcmp.eq.s32.totalorder %v1328_v52, %v115_v1  ;;  %vm127_vm9 = vcmp.eq.s32.totalorder %v1331_v53, %v115_v1  ;;  %v156_v5 = vadd.f32 %v140_v60, %v75_v0 }
  0x91   :  { %vm128_vm10 = vcmp.eq.s32.totalorder %v1334_v54, %v115_v1  ;;  %vm129_vm11 = vcmp.eq.s32.totalorder %v1337_v55, %v115_v1  ;;  %v142_v6 = vsel %vm126_vm8, 1.0, %v1235_v49  ;;  %v143_v7 = vsel %vm127_vm9, 1.0, %v1235_v49 }
  0x92   :  { %v144_v8 = vsel %vm128_vm10, 1.0, %v1235_v49  ;;  %vm61_vm12 = vcmp.eq.s32.totalorder %v1328_v52, %v50_v2  ;;  %vm62_vm13 = vcmp.eq.s32.totalorder %v1331_v53, %v50_v2  ;;  %v1369_v9 = vsel %vm129_vm11, 1.0, %v1235_v49 }
  0x93   :  { %vm63_vm14 = vcmp.eq.s32.totalorder %v1334_v54, %v50_v2  ;;  %vm64_vm15 = vcmp.eq.s32.totalorder %v1337_v55, %v50_v2  ;;  %v77_v10 = vsel %vm61_vm12, 1.0, %v1235_v49  ;;  %v1374_v11 = vpop.permute.xlu1 %179  ;;  %v1376_v12 = vpop.permute.xlu0 %176  ;;  %v78_v13 = vsel %vm62_vm13, 1.0, %v1235_v49 }
  0x94   :  { %v79_v14 = vsel %vm63_vm14, 1.0, %v1235_v49  ;;  %v80_v15 = vsel %vm64_vm15, 1.0, %v1235_v49  ;;  %vm191_vm0 = vcmp.eq.s32.totalorder %v1328_v52, %v1374_v11  ;;  %v158_v16 = vadd.f32 %v142_v6, %v77_v10 }
  0x95   :  { %v160_v17 = vadd.f32 %v144_v8, %v79_v14  ;;  %vm192_vm1 = vcmp.eq.s32.totalorder %v1331_v53, %v1374_v11  ;;  %vm193_vm2 = vcmp.eq.s32.totalorder %v1334_v54, %v1374_v11  ;;  %v207_v18 = vsel %vm191_vm0, 1.0, %v1235_v49 }
  0x96   :  { %v209_v19 = vsel %vm193_vm2, 1.0, %v1235_v49  ;;  %vm187_vm3 = vcmp.eq.s32.totalorder %v1328_v52, %v1376_v12  ;;  %vm188_vm4 = vcmp.eq.s32.totalorder %v1331_v53, %v1376_v12  ;;  %vm194_vm5 = vcmp.eq.s32.totalorder %v1337_v55, %v1374_v11 }
  0x97   :  { %v1395_v20 = vadd.f32 %v207_v18, %v158_v16  ;;  %v1397_v21 = vadd.f32 %v209_v19, %v160_v17  ;;  %vm189_vm6 = vcmp.eq.s32.totalorder %v1334_v54, %v1376_v12  ;;  %vm190_vm7 = vcmp.eq.s32.totalorder %v1337_v55, %v1376_v12  ;;  %v245_v22 = vpop.permute.xlu1 %244  ;;  %v242_v23 = vpop.permute.xlu0 %241 }
  0x98   :  { %v203_v24 = vsel %vm187_vm3, 1.0, %v1235_v49  ;;  %v205_v25 = vsel %vm189_vm6, 1.0, %v1235_v49  ;;  %vm256_vm8 = vcmp.eq.s32.totalorder %v1328_v52, %v245_v22  ;;  %vm258_vm9 = vcmp.eq.s32.totalorder %v1334_v54, %v245_v22 }
  0x99   :  { %v1407_v26 = vadd.f32 %v203_v24, %v154_v4  ;;  %v1409_v27 = vadd.f32 %v205_v25, %v156_v5  ;;  %v1412_v28 = vsel %vm256_vm8, 1.0, %v1235_v49  ;;  %v1415_v29 = vsel %vm258_vm9, 1.0, %v1235_v49 }
  0x9a   :  { %vm252_vm10 = vcmp.eq.s32.totalorder %v1328_v52, %v242_v23  ;;  %vm254_vm11 = vcmp.eq.s32.totalorder %v1334_v54, %v242_v23  ;;  %v155_v30 = vadd.f32 %v139_v59, %v74_v63  ;;  %v159_v31 = vadd.f32 %v143_v7, %v78_v13 }
  0x9b   :  { %v268_v32 = vsel %vm252_vm10, 1.0, %v1235_v49  ;;  %v270_v33 = vsel %vm254_vm11, 1.0, %v1235_v49  ;;  %v56_v34 = vpop.permute.xlu1 %55  ;;  %v53_v35 = vpop.permute.xlu0 %52  ;;  %v204_v36 = vsel %vm188_vm4, 1.0, %v1235_v49  ;;  %v208_v37 = vsel %vm192_vm1, 1.0, %v1235_v49 }
  0x9c   :  { %vm69_vm12 = vcmp.eq.s32.totalorder %v1328_v52, %v56_v34  ;;  %vm70_vm13 = vcmp.eq.s32.totalorder %v1331_v53, %v56_v34  ;;  %vm71_vm14 = vcmp.eq.s32.totalorder %v1334_v54, %v56_v34  ;;  %vm72_vm15 = vcmp.eq.s32.totalorder %v1337_v55, %v56_v34 }
  0x9d   :  { %v85_v38 = vsel %vm69_vm12, 1.0, %v1235_v49  ;;  %v86_v39 = vsel %vm70_vm13, 1.0, %v1235_v49  ;;  %v87_v40 = vsel %vm71_vm14, 1.0, %v1235_v49  ;;  %v88_v41 = vsel %vm72_vm15, 1.0, %v1235_v49 }
  0x9e   :  { %vm65_vm0 = vcmp.eq.s32.totalorder %v1328_v52, %v53_v35  ;;  %vm66_vm1 = vcmp.eq.s32.totalorder %v1331_v53, %v53_v35  ;;  %vm67_vm2 = vcmp.eq.s32.totalorder %v1334_v54, %v53_v35  ;;  %vm68_vm3 = vcmp.eq.s32.totalorder %v1337_v55, %v53_v35 }
  0x9f   :  { %v81_v42 = vsel %vm65_vm0, 1.0, %v1235_v49  ;;  %v82_v43 = vsel %vm66_vm1, 1.0, %v1235_v49  ;;  %v83_v44 = vsel %vm67_vm2, 1.0, %v1235_v49  ;;  %v84_v45 = vsel %vm68_vm3, 1.0, %v1235_v49  ;;  %v121_v59 = vpop.permute.xlu1 %120  ;;  %v118_v10 = vpop.permute.xlu0 %117 }
  0xa0   :  { %v220_v46 = vadd.f32 %v204_v36, %v155_v30  ;;  %v224_v47 = vadd.f32 %v208_v37, %v159_v31  ;;  %vm253_vm4 = vcmp.eq.s32.totalorder %v1331_v53, %v242_v23  ;;  %vm257_vm6 = vcmp.eq.s32.totalorder %v1331_v53, %v245_v22 }
  0xa1   :  { %v269_v48 = vsel %vm253_vm4, 1.0, %v1235_v49  ;;  %v273_v56 = vsel %vm257_vm6, 1.0, %v1235_v49  ;;  %v157_v57 = vadd.f32 %v1351_v61, %v1357_v3  ;;  %v161_v58 = vadd.f32 %v1369_v9, %v80_v15 }
  0xa2   :  { %v285_v60 = vadd.f32 %v269_v48, %v220_v46  ;;  %v289_v62 = vadd.f32 %v273_v56, %v224_v47  ;;  %v206_v63 = vsel %vm190_vm7, 1.0, %v1235_v49  ;;  %v210_v0 = vsel %vm194_vm5, 1.0, %v1235_v49 }
  0xa3   :  { %v222_v1 = vadd.f32 %v206_v63, %v157_v57  ;;  %v226_v2 = vadd.f32 %v210_v0, %v161_v58  ;;  %vm255_vm8 = vcmp.eq.s32.totalorder %v1337_v55, %v242_v23  ;;  %vm259_vm9 = vcmp.eq.s32.totalorder %v1337_v55, %v245_v22  ;;  %v186_v23 = vpop.permute.xlu1 %185 }
  0xa4   :  { %v301_v61 = vpack.c.bf16 %v289_v62, %v285_v60  ;;  %v271_v3 = vsel %vm255_vm8, 1.0, %v1235_v49  ;;  %v275_v4 = vsel %vm259_vm9, 1.0, %v1235_v49  ;;  %vm134_vm10 = vcmp.eq.s32.totalorder %v1328_v52, %v121_v59 }
  0xa5   :  { %v287_v5 = vadd.f32 %v271_v3, %v222_v1  ;;  %v291_v6 = vadd.f32 %v275_v4, %v226_v2  ;;  %vm135_vm7 = vcmp.eq.s32.totalorder %v1331_v53, %v121_v59  ;;  %vm136_vm11 = vcmp.eq.s32.totalorder %v1334_v54, %v121_v59 }
  0xa6   :  { %596 = vmatprep.mubr.bf16.mxu0 %v301_v61  ;;  %vm137_vm5 = vcmp.eq.s32.totalorder %v1337_v55, %v121_v59  ;;  %v150_v7 = vsel %vm134_vm10, 1.0, %v1235_v49  ;;  %v151_v8 = vsel %vm135_vm7, 1.0, %v1235_v49  ;;  %v152_v9 = vsel %vm136_vm11, 1.0, %v1235_v49 }
  0xa7   :  { %v303_v11 = vpack.c.bf16 %v291_v6, %v287_v5  ;;  %v153_v12 = vsel %vm137_vm5, 1.0, %v1235_v49  ;;  %v166_v13 = vadd.f32 %v150_v7, %v85_v38  ;;  %v167_v14 = vadd.f32 %v151_v8, %v86_v39  ;;  %v251_v37 = vpop.permute.xlu1 %250 }
  0xa8   :  { %v168_v15 = vadd.f32 %v152_v9, %v87_v40  ;;  %v169_v16 = vadd.f32 %v153_v12, %v88_v41  ;;  %v284_v17 = vadd.f32 %v268_v32, %v1407_v26  ;;  %v288_v18 = vadd.f32 %v1412_v28, %v1395_v20  ;;  %v183_v32 = vpop.permute.xlu0 %182  ;;  %v1174_v12 = vld [vmem:[%s1586_s2 + $0x20] sm:$0xff]  }
  0xa9   :  { %645 = vmatprep.mubr.bf16.mxu1 %v303_v11  ;;  %v286_v19 = vadd.f32 %v270_v33, %v1409_v27  ;;  %v290_v22 = vadd.f32 %v1415_v29, %v1397_v21  ;;  %vm130_vm12 = vcmp.eq.s32.totalorder %v1328_v52, %v118_v10  ;;  %vm131_vm13 = vcmp.eq.s32.totalorder %v1331_v53, %v118_v10 }
  0xaa   :  { %v300_v24 = vpack.c.bf16 %v288_v18, %v284_v17  ;;  %vm132_vm14 = vcmp.eq.s32.totalorder %v1334_v54, %v118_v10  ;;  %vm133_vm15 = vcmp.eq.s32.totalorder %v1337_v55, %v118_v10  ;;  %v146_v25 = vsel %vm130_vm12, 1.0, %v1235_v49  ;;  %v1179_v17 = vld [vmem:[%s1587_s3 + $0x38] sm:$0xff]  }
  0xab   :  { %v302_v26 = vpack.c.bf16 %v290_v22, %v286_v19  ;;  %v147_v20 = vsel %vm131_vm13, 1.0, %v1235_v49  ;;  %v148_v27 = vsel %vm132_vm14, 1.0, %v1235_v49  ;;  %v149_v28 = vsel %vm133_vm15, 1.0, %v1235_v49 }
  0xac   :  { %597 = vmatmul.mubr.bf16.vlgmr.msra.gmra.mxu0 %v300_v24  ;;  %v162_v21 = vadd.f32 %v146_v25, %v81_v42  ;;  %v163_v29 = vadd.f32 %v147_v20, %v82_v43  ;;  %v164_v30 = vadd.f32 %v148_v27, %v83_v44  ;;  %v165_v31 = vadd.f32 %v149_v28, %v84_v45  ;;  %v248_v56 = vpop.permute.xlu0 %247 }
  0xad   :  { %646 = vmatmul.mubr.bf16.vlgmr.msra.gmra.mxu1 %v302_v26  ;;  %vm199_vm0 = vcmp.eq.s32.totalorder %v1328_v52, %v186_v23  ;;  %vm200_vm1 = vcmp.eq.s32.totalorder %v1331_v53, %v186_v23  ;;  %vm201_vm2 = vcmp.eq.s32.totalorder %v1334_v54, %v186_v23  ;;  %vm202_vm3 = vcmp.eq.s32.totalorder %v1337_v55, %v186_v23 }
  0xae   :  { %v215_v33 = vsel %vm199_vm0, 1.0, %v1235_v49  ;;  %v216_v34 = vsel %vm200_vm1, 1.0, %v1235_v49  ;;  %v217_v35 = vsel %vm201_vm2, 1.0, %v1235_v49  ;;  %v218_v36 = vsel %vm202_vm3, 1.0, %v1235_v49  ;;  %1090 = vmatpush3.bf16.msra.mxu0 %v1324_v50  ;;  %1110 = vmatpush3.bf16.msra.mxu1 %v1179_v17 }
  0xaf   :  { %vm195_vm4 = vcmp.eq.s32.totalorder %v1328_v52, %v183_v32  ;;  %vm196_vm6 = vcmp.eq.s32.totalorder %v1331_v53, %v183_v32  ;;  %vm197_vm8 = vcmp.eq.s32.totalorder %v1334_v54, %v183_v32  ;;  %vm198_vm9 = vcmp.eq.s32.totalorder %v1337_v55, %v183_v32  ;;  %1111 = vmatprep.subr.bf16.mxu1 %v1235_v49 }
  0xb0   :  { %v211_v38 = vsel %vm195_vm4, 1.0, %v1235_v49  ;;  %v212_v39 = vsel %vm196_vm6, 1.0, %v1235_v49  ;;  %v213_v40 = vsel %vm197_vm8, 1.0, %v1235_v49  ;;  %v214_v41 = vsel %vm198_vm9, 1.0, %v1235_v49 }
  0xb1   :  { %v231_v42 = vadd.f32 %v215_v33, %v166_v13  ;;  %v232_v43 = vadd.f32 %v216_v34, %v167_v14  ;;  %v233_v50 = vadd.f32 %v217_v35, %v168_v15  ;;  %v234_v44 = vadd.f32 %v218_v36, %v169_v16  ;;  %v1175_v13 = vld [vmem:[%s1586_s2 + $0x18] sm:$0xff]   ;;  %v1176_v14 = vld [vmem:[%s1586_s2 + $0x10] sm:$0xff]   ;;  %v1177_v15 = vld [vmem:[%s1586_s2 + $0x8] sm:$0xff]  }
  0xb2   :  { %vm264_vm10 = vcmp.eq.s32.totalorder %v1328_v52, %v251_v37  ;;  %vm265_vm7 = vcmp.eq.s32.totalorder %v1331_v53, %v251_v37  ;;  %vm266_vm11 = vcmp.eq.s32.totalorder %v1334_v54, %v251_v37  ;;  %vm267_vm5 = vcmp.eq.s32.totalorder %v1337_v55, %v251_v37  ;;  %v1178_v16 = vld [vmem:[%s1586_s2] sm:$0xff]  }
  0xb3   :  { %v280_v45 = vsel %vm264_vm10, 1.0, %v1235_v49  ;;  %v281_v46 = vsel %vm265_vm7, 1.0, %v1235_v49  ;;  %v282_v47 = vsel %vm266_vm11, 1.0, %v1235_v49  ;;  %v283_v48 = vsel %vm267_vm5, 1.0, %v1235_v49 }
  0xb4   :  { %v296_v57 = vadd.f32 %v280_v45, %v231_v42  ;;  %v297_v58 = vadd.f32 %v281_v46, %v232_v43  ;;  %v298_v59 = vadd.f32 %v282_v47, %v233_v50  ;;  %v299_v60 = vadd.f32 %v283_v48, %v234_v44  ;;  %v1180_v47 = vld [vmem:[%s1587_s3 + $0x30] sm:$0xff]   ;;  %v1181_v48 = vld [vmem:[%s1587_s3 + $0x28] sm:$0xff]  }
  0xb5   :  { %v227_v62 = vadd.f32 %v211_v38, %v162_v21  ;;  %v228_v63 = vadd.f32 %v212_v39, %v163_v29  ;;  %v229_v0 = vadd.f32 %v213_v40, %v164_v30  ;;  %v230_v1 = vadd.f32 %v214_v41, %v165_v31  ;;  %1112 = vmatpush3.bf16.msra.mxu1 %v1180_v47 }
  0xb6   :  { %vm260_vm12 = vcmp.eq.s32.totalorder %v1328_v52, %v248_v56  ;;  %vm261_vm13 = vcmp.eq.s32.totalorder %v1331_v53, %v248_v56  ;;  %vm262_vm14 = vcmp.eq.s32.totalorder %v1334_v54, %v248_v56  ;;  %vm263_vm15 = vcmp.eq.s32.totalorder %v1337_v55, %v248_v56  ;;  %v1172_v54 = vld [vmem:[%s1586_s2 + $0x30] sm:$0xff]   ;;  %v1173_v55 = vld [vmem:[%s1586_s2 + $0x28] sm:$0xff]   ;;  %1113 = vmatprep.subr.bf16.mxu1 %v1235_v49  ;;  %v1182_v56 = vld [vmem:[%s1587_s3 + $0x20] sm:$0xff]  }
  0xb7   :  { %v276_v2 = vsel %vm260_vm12, 1.0, %v1235_v49  ;;  %v277_v61 = vsel %vm261_vm13, 1.0, %v1235_v49  ;;  %v278_v3 = vsel %vm262_vm14, 1.0, %v1235_v49  ;;  %v279_v4 = vsel %vm263_vm15, 1.0, %v1235_v49  ;;  %1091 = vmatprep.subr.bf16.mxu0 %v1172_v54 }
  0xb8   :  { %v292_v5 = vadd.f32 %v276_v2, %v227_v62  ;;  %v293_v6 = vadd.f32 %v277_v61, %v228_v63  ;;  %v294_v7 = vadd.f32 %v278_v3, %v229_v0  ;;  %v295_v8 = vadd.f32 %v279_v4, %v230_v1  ;;  %1092 = vmatpush3.bf16.msra.mxu0 %v1172_v54 }
  0xb9   :  { %1093 = vmatprep.subr.bf16.mxu0 %v1173_v55  ;;  %1114 = vmatpush3.bf16.msra.mxu1 %v1181_v48  ;;  %vm1236_vm0 = vmmov 0   ;;  %vm778_vm1 = vcmp.lt.s32.totalorder %v1328_v52, 8  ;;  %vm781_vm2 = vcmp.ge.s32.totalorder %v1328_v52, 8  ;;  %vm782_vm3 = vcmp.lt.s32.totalorder %v1328_v52, 16 }
  0xba   :  { %v305_v9 = vpack.c.bf16 %v297_v58, %v293_v6  ;;  %v307_v10 = vpack.c.bf16 %v299_v60, %v295_v8  ;;  %v304_v11 = vpack.c.bf16 %v296_v57, %v292_v5  ;;  %v306_v53 = vpack.c.bf16 %v298_v59, %v294_v7  ;;  %1115 = vmatprep.subr.bf16.mxu1 %v1235_v49  ;;  %v1183_v57 = vld [vmem:[%s1587_s3 + $0x18] sm:$0xff]   ;;  %v1184_v58 = vld [vmem:[%s1587_s3 + $0x10] sm:$0xff]   ;;  %v1185_v59 = vld [vmem:[%s1587_s3 + $0x8] sm:$0xff]  }
  0xbb   :  { %v1186_v60 = vld [vmem:[%s1587_s3] sm:$0xff]   ;;  %v1237_v62 = vmov 15   ;;  %vm783_vm4 = vmand %vm781_vm2, %vm782_vm3  ;;  %vm785_vm6 = vcmp.ge.s32.totalorder %v1328_v52, 16  ;;  %vm786_vm8 = vcmp.lt.s32.totalorder %v1328_v52, 24  ;;  %v790_v1 = vshrl.u32 %v36_v51, 7 }
  0xbc   :  { %604 = vmatprep.mubr.bf16.mxu0 %v305_v9  ;;  %653 = vmatprep.mubr.bf16.mxu1 %v307_v10  ;;  %v780_v63 = vsel %vm778_vm1, 14, %v1237_v62  ;;  %vm787_vm9 = vmand %vm785_vm6, %vm786_vm8  ;;  %vm845_vm11 = vcmask 1041409  }
  0xbd   :  { %605 = vmatmul.mubr.bf16.gmra.mxu0 %v304_v11  ;;  %654 = vmatmul.mubr.bf16.gmra.mxu1 %v306_v53  ;;  %v784_v0 = vsel %vm783_vm4, 13, %v780_v63  ;;  %v791_v2 = vadd.s32 8, %v790_v1 }
  0xbe   :  { %1094 = vmatpush3.bf16.msra.mxu0 %v1173_v55  ;;  %1116 = vmatpush3.bf16.msra.mxu1 %v1182_v56 }
  0xbf   :  { %1095 = vmatprep.subr.bf16.mxu0 %v1174_v12  ;;  %1117 = vmatprep.subr.bf16.mxu1 %v1235_v49 }
  0xc0   :  { %1125 = vmatprep.mubr.msk.bf16.mxu1 %vm1236_vm0, %v1235_v49 }
  0xc2   :  { %1096 = vmatpush3.bf16.msra.mxu0 %v1174_v12  ;;  %1118 = vmatpush3.bf16.msra.mxu1 %v1183_v57 }
  0xc3   :  { %1097 = vmatprep.subr.bf16.mxu0 %v1175_v13  ;;  %1119 = vmatprep.subr.bf16.mxu1 %v1235_v49 }
  0xc6   :  { %1098 = vmatpush3.bf16.msra.mxu0 %v1175_v13  ;;  %1120 = vmatpush3.bf16.msra.mxu1 %v1184_v58 }
  0xc7   :  { %1099 = vmatprep.subr.bf16.mxu0 %v1176_v14  ;;  %1121 = vmatprep.subr.bf16.mxu1 %v1235_v49 }
  0xca   :  { %1100 = vmatpush3.bf16.msra.mxu0 %v1176_v14  ;;  %1122 = vmatpush3.bf16.msra.mxu1 %v1185_v59 }
  0xcb   :  { %1101 = vmatprep.subr.bf16.mxu0 %v1177_v15  ;;  %1123 = vmatprep.subr.bf16.mxu1 %v1235_v49  ;;  %v788_v49 = vsel %vm787_vm9, 12, %v784_v0 }
  0xcc   :  { %vm792_vm10 = vcmp.le.s32.totalorder %v790_v1, %v788_v49  ;;  %vm793_vm7 = vcmp.le.s32.totalorder %v791_v2, %v788_v49 }
  0xce   :  { %1102 = vmatpush3.bf16.msra.mxu0 %v1177_v15  ;;  %1124 = vmatpush3.bf16.msra.mxu1 %v1186_v60 }
  0xcf   :  { %1103 = vmatprep.subr.bf16.mxu0 %v1178_v16 }
  0xd2   :  { %1104 = vmatpush3.bf16.msra.mxu0 %v1178_v16 }
 0x16c   :  { %v1030_v18 = vpop.f32.mrf.mxu0 }
 0x16d   :  { %v1058_v19 = vpop.f32.mrf.mxu1 }
 0x16e   :  { %v1031_v22 = vpop.f32.mrf.mxu0 }
 0x16f   :  { %v1059_v23 = vpop.f32.mrf.mxu1  ;;  %v1032_v26 = vadd.f32 %v1031_v22, %v1030_v18 }
 0x170   :  { %v1033_v24 = vpop.f32.mrf.mxu0  ;;  %v1060_v20 = vadd.f32 %v1059_v23, %v1058_v19 }
 0x171   :  { %v1061_v25 = vpop.f32.mrf.mxu1 }
 0x172   :  { %v1034_v27 = vpop.f32.mrf.mxu0  ;;  %v648_v30 = vadd.f32 %v1060_v20, %v1032_v26  ;;  %v1005_v20 = vld [vmem:[%s1588_s4] ss:$0 sm:$0xff] }
 0x173   :  { %v1035_v28 = vadd.f32 %v1034_v27, %v1033_v24  ;;  %v1062_v21 = vpop.f32.mrf.mxu1 }
 0x174   :  { %v1063_v29 = vadd.f32 %v1062_v21, %v1061_v25 }
 0x176   :  { %v651_v31 = vadd.f32 %v1063_v29, %v1035_v28 }
 0x178   :  { %v662_v32 = vpack.c.bf16 %v651_v31, %v648_v30 }
 0x17a   :  { %1105 = vmatprep.mubr.bf16.mxu0 %v662_v32 }
 0x17d   :  { %v1036_v33 = vpop.f32.mrf.mxu0  ;;  %v1064_v34 = vpop.f32.mrf.mxu1 }
 0x17f   :  { %v1037_v35 = vpop.f32.mrf.mxu0  ;;  %v1065_v36 = vpop.f32.mrf.mxu1 }
 0x180   :  { %v1038_v39 = vadd.f32 %v1037_v35, %v1036_v33  ;;  %v1066_v40 = vadd.f32 %v1065_v36, %v1064_v34 }
 0x181   :  { %v1039_v37 = vpop.f32.mrf.mxu0  ;;  %v1067_v38 = vpop.f32.mrf.mxu1 }
 0x182   :  { %v656_v44 = vadd.f32 %v1066_v40, %v1038_v39 }
 0x183   :  { %v1040_v41 = vpop.f32.mrf.mxu0  ;;  %v1068_v42 = vpop.f32.mrf.mxu1 }
 0x184   :  { %v1041_v43 = vadd.f32 %v1040_v41, %v1039_v37  ;;  %v1069_v50 = vadd.f32 %v1068_v42, %v1067_v38 }
 0x186   :  { %v659_v45 = vadd.f32 %v1069_v50, %v1041_v43 }
 0x188   :  { %v663_v46 = vpack.c.bf16 %v659_v45, %v656_v44 }
 0x18a   :  { %1106 = vmatmul.mubr.bf16.vlgmr.msra.gmra.mxu0 %v663_v46 }
 0x24a   :  { %v1107_v61 = vpop.f32.mrf.mxu0 }
 0x24b   :  { %v800_v5 = vsel %vm792_vm10, %v1107_v61, -1e+30 }
 0x24c   :  { %v762_v3 = vpop.f32.mrf.mxu0 }
 0x24d   :  { %v798_v9 = vsel %vm792_vm10, %v762_v3, -1e+30 }
 0x24e   :  { %v1108_v4 = vpop.f32.mrf.mxu0 }
 0x24f   :  { %v801_v6 = vsel %vm793_vm7, %v1108_v4, -1e+30 }
 0x250   :  { %v809_v7 = vmax.f32 %v800_v5, %v801_v6  ;;  %v765_v8 = vpop.f32.mrf.mxu0 }
 0x251   :  { %v799_v10 = vsel %vm793_vm7, %v765_v8, -1e+30 }
 0x252   :  { %v810_v11 = vrot.slane %v809_v7, 4  ;;  %v802_v53 = vmax.f32 %v798_v9, %v799_v10 }
 0x254   :  { %v811_v52 = vmax.f32 %v809_v7, %v810_v11  ;;  %v803_v54 = vrot.slane %v802_v53, 4 }
 0x256   :  { %v812_v55 = vrot.slane %v811_v52, 2  ;;  %v804_v12 = vmax.f32 %v802_v53, %v803_v54 }
 0x258   :  { %v813_v51 = vmax.f32 %v811_v52, %v812_v55  ;;  %v805_v13 = vrot.slane %v804_v12, 2 }
 0x25a   :  { %v814_v14 = vrot.slane %v813_v51, 1  ;;  %v806_v15 = vmax.f32 %v804_v12, %v805_v13 }
 0x25c   :  { %v815_v16 = vmax.f32 %v813_v51, %v814_v14  ;;  %v807_v17 = vrot.slane %v806_v15, 1 }
 0x25e   :  { %v817_v18 = vpack.c.bf16 %v815_v16, %v815_v16  ;;  %v808_v19 = vmax.f32 %v806_v15, %v807_v17 }
 0x260   :  { %v816_v22 = vpack.c.bf16 %v808_v19, %v808_v19  ;;  %v844_v23 = vunpack.c.l.b16 %v817_v18 }
 0x262   :  { %v843_v24 = vunpack.c.l.b16 %v816_v22 }
 0x264   :  { %v846_v25 = vsel %vm845_vm11, %v844_v23, %v843_v24 }
 0x265   :  { %v847_v26 = vpack.c.b16 %v846_v25, %v846_v25 }
 0x267   :  { %1126 = vmatmul.mubr.bf16.vlgmr.msra.gmra.mxu1 %v847_v26 }
 0x327   :  { %v931_v27 = vpop.f32.mrf.mxu1 }
 0x328   :  { %v932_v28 = vadd.f32 %v1005_v20, %v931_v27 }
 0x329   :  { %v1127_v21 = vpop.f32.mrf.mxu1 }
 0x32a   :  { %937 = vst [vmem:[#allocation5] sm:$0x3] %v932_v28 }
 0x32b   :  { %v934_v29 = vpop.f32.mrf.mxu1 }
 0x32c   :  { %1218 = shalt.err (!%p1215_p9)
}
 0x32d   :  { %947 = dma.vmem_to_hbm [thread:$0]  %s945_s10, 32, %s1589_s5, [#allocation4]   ;;  %v1128_v30 = vpop.f32.mrf.mxu1 }
 0x32e   :  { %1229 = dma.done.wait [#allocation4], 32  }
 0x32f   :  { %1230 = vsyncadd [#allocation4], 4294967264 }
 0x330   :  { %951 = vsyncpa [#allocation3], 1 }
 0x331   :  { %952 = vsyncpa [#allocation4], 1 }

</bundles_post_ra>
